<compile_context>
chip_gen: v5e
topology: v5e:2x2
jax: 0.10.0
libtpu: 0.0.40
codegen_flags: <defaults>
</compile_context>

<pallas_src>
import jax
import jax.numpy as jnp
import numpy as np
from jax.experimental import pallas as pl
from jax.experimental.pallas import tpu as pltpu

D_IN = 10      # fc1 in-features
D_MID = 20     # fc1 out / bn / fc2 in-features
D_OUT = 20     # fc2 out-features
EPS = 1e-5
MAX_TB = 512   # batch tile cap (per-step overhead amortization, VMEM-friendly on v5e/v7x)


def bn_before_linear_kernel(x_ref, w1_ref, w2_ref, b2_ref, o_ref):
    """Fused fc1 + relu + (BN folded into) fc2 for one batch tile.

    x_ref:  (TB, D_IN)       VMEM f32
    w1_ref: (D_IN, D_MID)    VMEM f32  (fc1 weight, (in, out) layout)
    w2_ref: (D_MID, D_OUT)   VMEM f32  (fc2 weight^T with BN scale folded in)
    b2_ref: (1, D_OUT)       VMEM f32  (BN shift pushed through fc2)
    o_ref:  (TB, D_OUT)      VMEM f32
    """
    h = jnp.dot(x_ref[...], w1_ref[...], preferred_element_type=jnp.float32)
    h = jnp.maximum(h, 0.0)
    y = jnp.dot(h, w2_ref[...], preferred_element_type=jnp.float32)
    o_ref[...] = (y + b2_ref[...]).astype(o_ref.dtype)


def bn_before_linear_forward(x, w1, w2, gamma, beta, running_mean, running_var,
                             eps=EPS, max_tb=MAX_TB):
    """x: (B, 10); w1: (20, 10); w2: (20, 20) — PyTorch (out, in) layout."""
    B, d_in = x.shape
    assert d_in == D_IN
    assert w1.shape == (D_MID, D_IN)
    assert w2.shape == (D_OUT, D_MID)

    # BatchNorm1d eval-mode folding: bn(h) = h * scale + bias_bn
    inv_std = 1.0 / jnp.sqrt(running_var.astype(jnp.float32) + eps)
    scale = (gamma.astype(jnp.float32) * inv_std)                       # (D_MID,)
    bias_bn = (beta.astype(jnp.float32)
               - running_mean.astype(jnp.float32) * scale)              # (D_MID,)

    # (in, out) layouts for plain row-major matmuls in the kernel.
    w1t = jnp.transpose(w1).astype(jnp.float32)                         # (D_IN, D_MID)
    w2t = jnp.transpose(w2).astype(jnp.float32)                         # (D_MID, D_OUT)

    # Fold BN into fc2:  bn(h) @ w2t = h @ (scale[:, None] * w2t) + (bias_bn @ w2t)
    w2t_folded = w2t * scale[:, None]                                   # (D_MID, D_OUT)
    out_bias = (bias_bn @ w2t).reshape(1, D_OUT)                        # (1, D_OUT)

    x_f32 = x.astype(jnp.float32)

    # Batch tile: multiple of 8 (sublane alignment), capped at max_tb.
    tb = min(max_tb, ((B + 7) // 8) * 8)
    tb = ((tb + 7) // 8) * 8
    b_pad = ((B + tb - 1) // tb) * tb
    if b_pad != B:
        x_f32 = jnp.pad(x_f32, ((0, b_pad - B), (0, 0)))
    grid = (b_pad // tb,)

    cost = pl.CostEstimate(
        flops=2 * b_pad * D_IN * D_MID + 2 * b_pad * D_MID * D_OUT,
        transcendentals=0,
        bytes_accessed=4 * (b_pad * D_IN + D_IN * D_MID + D_MID * D_OUT
                            + D_OUT + b_pad * D_OUT),
    )

    out = pl.pallas_call(
        bn_before_linear_kernel,
        out_shape=jax.ShapeDtypeStruct((b_pad, D_OUT), jnp.float32),
        grid=grid,
        in_specs=[
            pl.BlockSpec((tb, D_IN), lambda i: (i, 0)),        # x: tiled over batch
            pl.BlockSpec((D_IN, D_MID), lambda i: (0, 0)),     # w1t: VMEM-resident
            pl.BlockSpec((D_MID, D_OUT), lambda i: (0, 0)),    # w2t folded: VMEM-resident
            pl.BlockSpec((1, D_OUT), lambda i: (0, 0)),        # bias: VMEM-resident
        ],
        out_specs=pl.BlockSpec((tb, D_OUT), lambda i: (i, 0)),
        compiler_params=pltpu.CompilerParams(
            dimension_semantics=("parallel",),
        ),
        cost_estimate=cost,
    )(x_f32, w1t, w2t_folded, out_bias)

    return out[:B]


def reference_forward(x, w1, w2, gamma, beta, mean, var, eps=EPS):
    """Pure-JAX reference mirroring the PyTorch forward (BatchNorm1d in eval mode)."""
    h = jnp.dot(x, w1.T)
    h = jnp.maximum(h, 0.0)
    inv_std = 1.0 / jnp.sqrt(var + eps)
    h = (h - mean) * (gamma * inv_std) + beta
    return jnp.dot(h, w2.T)


if __name__ == "__main__":
    key = jax.random.PRNGKey(0)
    k_x, k_w1, k_w2, k_g, k_b, k_m, k_v = jax.random.split(key, 7)

    # Small deterministic shapes: batch=32, features=10 (the module requires 10).
    B = 32
    x = jax.random.normal(k_x, (B, D_IN), dtype=jnp.float32)

    # Linear weights ~ fan-in scaled normals, bias=False.
    w1 = jax.random.normal(k_w1, (D_MID, D_IN), jnp.float32) / np.sqrt(D_IN)
    w2 = jax.random.normal(k_w2, (D_OUT, D_MID), jnp.float32) / np.sqrt(D_MID)

    # BatchNorm1d(20) parameters / running stats (eval-mode semantics).
    gamma = 1.0 + 0.1 * jax.random.normal(k_g, (D_MID,), jnp.float32)
    beta = 0.1 * jax.random.normal(k_b, (D_MID,), jnp.float32)
    running_mean = 0.1 * jax.random.normal(k_m, (D_MID,), jnp.float32)
    running_var = 1.0 + 0.1 * jax.random.uniform(k_v, (D_MID,), jnp.float32)

    out = bn_before_linear_forward(x, w1, w2, gamma, beta,
                                   running_mean, running_var)
    out = jax.block_until_ready(out)

    ref = reference_forward(x, w1, w2, gamma, beta, running_mean, running_var)
    ref = jax.block_until_ready(ref)

    assert out.shape == (B, D_OUT), out.shape
    np.testing.assert_allclose(np.asarray(out), np.asarray(ref),
                               rtol=1e-3, atol=1e-3)

    print("KERNEL_OK")
</pallas_src>

<mosaic_0001>
module attributes {stable_mosaic.version = 11 : i64} {
  func.func @bn_before_linear_kernel(%arg0: i32, %arg1: memref<32x10xf32, #tpu.memory_space<vmem>>, %arg2: memref<10x20xf32, #tpu.memory_space<vmem>>, %arg3: memref<20x20xf32, #tpu.memory_space<vmem>>, %arg4: memref<1x20xf32, #tpu.memory_space<vmem>>, %arg5: memref<32x20xf32, #tpu.memory_space<vmem>>) attributes {dimension_semantics = [#tpu.dimension_semantics<parallel>], iteration_bounds = array<i64: 1>, scalar_prefetch = 0 : i64, scratch_operands = 0 : i64, tpu.core_type = #tpu.core_type<tc>, window_params = [{transform_indices = @transform_0, window_bounds = array<i64: 32, 10>}, {pipeline_mode = #tpu.pipeline_mode<synchronous>, transform_indices = @transform_1, window_bounds = array<i64: 10, 20>}, {pipeline_mode = #tpu.pipeline_mode<synchronous>, transform_indices = @transform_2, window_bounds = array<i64: 20, 20>}, {pipeline_mode = #tpu.pipeline_mode<synchronous>, transform_indices = @transform_3, window_bounds = array<i64: 1, 20>}, {transform_indices = @transform_4, window_bounds = array<i64: 32, 20>}]} {
    %c0 = arith.constant 0 : index
    %c0_0 = arith.constant 0 : index
    %0 = vector.load %arg1[%c0, %c0_0] : memref<32x10xf32, #tpu.memory_space<vmem>>, vector<32x10xf32>
    %c0_1 = arith.constant 0 : index
    %c0_2 = arith.constant 0 : index
    %1 = vector.load %arg2[%c0_1, %c0_2] : memref<10x20xf32, #tpu.memory_space<vmem>>, vector<10x20xf32>
    %cst = arith.constant dense<0.000000e+00> : vector<32x20xf32>
    %2 = tpu.matmul %0, %1, %cst {dimension_numbers = #tpu.dot_dimension_numbers<[1], [0], [0], [1], [0, 0, 1, 1], [], []>} : vector<32x10xf32>, vector<10x20xf32>, vector<32x20xf32> -> vector<32x20xf32>
    %cst_3 = arith.constant 0.000000e+00 : f32
    %3 = vector.broadcast %cst_3 : f32 to vector<32x20xf32>
    %4 = arith.maximumf %2, %3 : vector<32x20xf32>
    %c0_4 = arith.constant 0 : index
    %c0_5 = arith.constant 0 : index
    %5 = vector.load %arg3[%c0_4, %c0_5] : memref<20x20xf32, #tpu.memory_space<vmem>>, vector<20x20xf32>
    %cst_6 = arith.constant dense<0.000000e+00> : vector<32x20xf32>
    %6 = tpu.matmul %4, %5, %cst_6 {dimension_numbers = #tpu.dot_dimension_numbers<[1], [0], [0], [1], [0, 0, 1, 1], [], []>} : vector<32x20xf32>, vector<20x20xf32>, vector<32x20xf32> -> vector<32x20xf32>
    %c0_7 = arith.constant 0 : index
    %c0_8 = arith.constant 0 : index
    %7 = vector.load %arg4[%c0_7, %c0_8] : memref<1x20xf32, #tpu.memory_space<vmem>>, vector<1x20xf32>
    %8 = vector.broadcast %7 : vector<1x20xf32> to vector<32x20xf32>
    %9 = arith.addf %6, %8 : vector<32x20xf32>
    %c0_9 = arith.constant 0 : index
    %c0_10 = arith.constant 0 : index
    %10 = vector.load %arg5[%c0_9, %c0_10] : memref<32x20xf32, #tpu.memory_space<vmem>>, vector<32x20xf32>
    tpu.vector_store %arg5[%c0_9, %c0_10], %9 {strides = array<i32>} : memref<32x20xf32, #tpu.memory_space<vmem>>, vector<32x20xf32>,
    return
  }
  func.func @transform_0(%arg0: i32) -> (i32, i32) {
    %c0_i32 = arith.constant 0 : i32
    %c0_i32_0 = arith.constant 0 : i32
    return %arg0, %c0_i32 : i32, i32
  }
  func.func @transform_1(%arg0: i32) -> (i32, i32) {
    %c0_i32 = arith.constant 0 : i32
    %c0_i32_0 = arith.constant 0 : i32
    %c0_i32_1 = arith.constant 0 : i32
    return %c0_i32, %c0_i32_0 : i32, i32
  }
  func.func @transform_2(%arg0: i32) -> (i32, i32) {
    %c0_i32 = arith.constant 0 : i32
    %c0_i32_0 = arith.constant 0 : i32
    %c0_i32_1 = arith.constant 0 : i32
    return %c0_i32, %c0_i32_0 : i32, i32
  }
  func.func @transform_3(%arg0: i32) -> (i32, i32) {
    %c0_i32 = arith.constant 0 : i32
    %c0_i32_0 = arith.constant 0 : i32
    %c0_i32_1 = arith.constant 0 : i32
    return %c0_i32, %c0_i32_0 : i32, i32
  }
  func.func @transform_4(%arg0: i32) -> (i32, i32) {
    %c0_i32 = arith.constant 0 : i32
    %c0_i32_0 = arith.constant 0 : i32
    return %arg0, %c0_i32 : i32, i32
  }
}

</mosaic_0001>

<bundles_post_ra>
// kernel: tpu_custom_call.1
= control target key start
LH: loop header
LB: loop body
LE: loop exit
PB: predicated region body
PF: predicated region fallthrough
CT: control target
= control target key end

     0   :  { %vm36_vm0 = vcmask 1041408   ;;  %vm23_vm1 = vcmask 80896   ;;  %vm93_vm2 = vcmask 1043456   ;;  %vm80_vm3 = vcmask 162816   ;;  %s225_s1 = inlined_call_operand.vmem [shape: f32[10,20], index: 1, kind: input, shape index: {}]   ;;  %s226_s0 = inlined_call_operand.vmem [shape: f32[32,10], index: 0, kind: input, shape index: {}]   ;;  %s227_s2 = inlined_call_operand.vmem [shape: f32[20,20], index: 2, kind: input, shape index: {}]   ;;  %s228_s3 = inlined_call_operand.vmem [shape: f32[1,20], index: 3, kind: input, shape index: {}]   ;;  %s229_s4 = inlined_call_operand.vmem [shape: f32[32,20], index: 4, kind: output, shape index: {}]  }
   0x1   :  { %v22_v0 = vld [vmem:[%s225_s1 + $0x8] sm:$0x3]  ;;  %v21_v1 = vld [vmem:[%s225_s1] sm:$0xff]  ;;  %v75_v4 = vld [vmem:[%s227_s2 + $0x10] sm:$0xf] }
   0x2   :  { %134 = vmatpush.msk.msra.mxu0 %vm36_vm0, %v22_v0  ;;  %144 = vmatpush.msk.msra.mxu3 %vm36_vm0, %v22_v0  ;;  %v17_v2 = vld [vmem:[%s226_s0] sm:$0xff]  ;;  %v18_v3 = vld [vmem:[%s226_s0 + $0x8] sm:$0xff]  ;;  %v19_v5 = vld [vmem:[%s226_s0 + $0x10] sm:$0xff] }
   0x3   :  { %139 = vmatpush.msk.msra.mxu1 %vm93_vm2, %v75_v4  ;;  %146 = vmatpush.msk.msra.mxu2 %vm93_vm2, %v75_v4  ;;  %v20_v6 = vld [vmem:[%s226_s0 + $0x18] sm:$0xff]  ;;  %v74_v7 = vld [vmem:[%s227_s2 + $0x8] sm:$0xff]  ;;  %v73_v8 = vld [vmem:[%s227_s2] sm:$0xff] }
   0x4   :  { %55 = vmatpush.msra.mxu0 %v21_v1  ;;  %145 = vmatpush.msra.mxu3 %v21_v1  ;;  %v149_v17 = vld [vmem:[%s228_s3] ss:$0 sm:$0xff] }
   0x5   :  { %135 = vmatmul.msk.f32.vlgmr.msra.gmra.mxu0 %vm23_vm1, %v17_v2  ;;  %136 = vmatmul.msk.f32.vlgmr.msra.gmra.mxu3 %vm23_vm1, %v18_v3 }
   0x6   :  { %111 = vmatpush.msra.mxu1 %v74_v7  ;;  %147 = vmatpush.msra.mxu2 %v74_v7 }
   0x8   :  { %112 = vmatpush.msra.mxu1 %v73_v8  ;;  %148 = vmatpush.msra.mxu2 %v73_v8 }
   0xd   :  { %137 = vmatmul.msk.f32.gmra.mxu3 %vm23_vm1, %v19_v5 }
  0x15   :  { %138 = vmatmul.msk.f32.gmra.mxu3 %vm23_vm1, %v20_v6 }
  0x82   :  { %v57_v9 = vpop.f32.mrf.mxu0 }
  0x83   :  { %v69_v10 = vmax.f32 %v57_v9, 0.0 }
  0x85   :  { %140 = vmatmul.msk.f32.vlgmr.msra.gmra.mxu1 %vm80_vm3, %v69_v10 }
  0x88   :  { %v60_v11 = vpop.f32.mrf.mxu3 }
  0x89   :  { %v70_v12 = vmax.f32 %v60_v11, 0.0 }
  0x8d   :  { %141 = vmatmul.msk.f32.gmra.mxu1 %vm80_vm3, %v70_v12 }
  0x90   :  { %v63_v13 = vpop.f32.mrf.mxu3 }
  0x91   :  { %v71_v14 = vmax.f32 %v63_v13, 0.0 }
  0x93   :  { %142 = vmatmul.msk.f32.vlgmr.msra.gmra.mxu2 %vm80_vm3, %v71_v14 }
  0x98   :  { %v66_v15 = vpop.f32.mrf.mxu3 }
  0x99   :  { %v72_v16 = vmax.f32 %v66_v15, 0.0 }
  0x9b   :  { %143 = vmatmul.msk.f32.gmra.mxu2 %vm80_vm3, %v72_v16 }
 0x102   :  { %v114_v18 = vpop.f32.mrf.mxu1 }
 0x103   :  { %v115_v19 = vadd.f32 %v149_v17, %v114_v18 }
 0x105   :  { %126 = vst.msk [vmem:[%s229_s4] sm:$0xff] %vm80_vm3, %v115_v19 }
 0x10a   :  { %v117_v20 = vpop.f32.mrf.mxu1 }
 0x10b   :  { %v118_v21 = vadd.f32 %v149_v17, %v117_v20 }
 0x10d   :  { %127 = vst.msk [vmem:[%s229_s4 + $0x8] sm:$0xff] %vm80_vm3, %v118_v21 }
 0x116   :  { %v120_v22 = vpop.f32.mrf.mxu2 }
 0x117   :  { %v121_v23 = vadd.f32 %v149_v17, %v120_v22 }
 0x119   :  { %128 = vst.msk [vmem:[%s229_s4 + $0x10] sm:$0xff] %vm80_vm3, %v121_v23 }
 0x11e   :  { %v123_v24 = vpop.f32.mrf.mxu2 }
 0x11f   :  { %v124_v25 = vadd.f32 %v149_v17, %v123_v24 }
 0x121   :  { %129 = vst.msk [vmem:[%s229_s4 + $0x18] sm:$0xff] %vm80_vm3, %v124_v25 }

</bundles_post_ra>
